<compile_context>
chip_gen: v6e
topology: v6e:2x2x1
jax: 0.10.0
libtpu: 0.0.40
codegen_flags: <defaults>
</compile_context>

<pallas_src>
import functools

import jax
import jax.numpy as jnp
from jax.experimental import pallas as pl
from jax.experimental.pallas import tpu as pltpu


def fcdp_kernel(x_ref, w1_ref, b1_ref, w2_ref, b2_ref, w3_ref, b3_ref,
                ratio_ref, oadj_ref, out_ref):
    cd = w1_ref.dtype
    # x arrives f32 from HBM; cast to the compute dtype in VMEM (no extra HBM pass)
    x = x_ref[...].astype(cd)
    # hidden layer 1: Linear + ReLU (f32 accumulation on the MXU)
    h = jnp.dot(x, w1_ref[...],
                preferred_element_type=jnp.float32) + b1_ref[...]
    h = jnp.maximum(h, 0.0)
    # hidden layer 2: Linear + ReLU
    h = jnp.dot(h.astype(cd), w2_ref[...],
                preferred_element_type=jnp.float32) + b2_ref[...]
    h = jnp.maximum(h, 0.0)
    # output layer: Linear + Tanh
    y = jnp.dot(h.astype(cd), w3_ref[...],
                preferred_element_type=jnp.float32) + b3_ref[...]
    y = jnp.tanh(y)
    # folded RescaleLayer: (y - tanh(-inf)) * ratio + action_min
    #                    = y * ratio + (ratio + action_min)
    out_ref[...] = (y * ratio_ref[...] + oadj_ref[...]).astype(out_ref.dtype)


@functools.partial(jax.jit, static_argnames=("block_b", "compute_dtype"))
def fcdp_forward(x, w1, b1, w2, b2, w3, b3, ratio, action_min, *,
                 block_b=2048, compute_dtype=jnp.bfloat16):
    B, D = x.shape
    out_dim = w3.shape[1]
    SUB = 8  # f32 sublane multiple; x and the output cross HBM in f32

    def round_up(v, m):
        return ((v + m - 1) // m) * m

    # Batch tile: large enough to amortize per-grid-step overhead, but capped
    # at ~ceil(B/2) (rounded up to a sublane multiple) so there are at least
    # two "parallel" tiles to shard across v7x's two TensorCores when B allows.
    half = round_up(max(-(-B // 2), SUB), SUB)
    bb = max(SUB, min(round_up(int(block_b), SUB), half))
    n_tiles = pl.cdiv(B, bb)  # ragged last tile: Pallas clips read & writeback

    # Small parameters: weights in the compute dtype, biases / rescale in f32.
    xf = x.astype(jnp.float32)
    w1c = w1.astype(compute_dtype)
    w2c = w2.astype(compute_dtype)
    w3c = w3.astype(compute_dtype)
    b1r = b1.reshape(1, -1).astype(jnp.float32)
    b2r = b2.reshape(1, -1).astype(jnp.float32)
    b3r = b3.reshape(1, -1).astype(jnp.float32)
    ratio_r = ratio.reshape(1, -1).astype(jnp.float32)
    oadj_r = (ratio + action_min).reshape(1, -1).astype(jnp.float32)

    def const_spec(arr):
        # same full block every grid step -> stays resident in VMEM
        return pl.BlockSpec(arr.shape, lambda i: (0, 0))

    out = pl.pallas_call(
        fcdp_kernel,
        out_shape=jax.ShapeDtypeStruct((B, out_dim), jnp.float32),
        grid_spec=pltpu.PrefetchScalarGridSpec(
            num_scalar_prefetch=0,
            grid=(n_tiles,),
            in_specs=[
                pl.BlockSpec((bb, D), lambda i: (i, 0)),
                const_spec(w1c), const_spec(b1r),
                const_spec(w2c), const_spec(b2r),
                const_spec(w3c), const_spec(b3r),
                const_spec(ratio_r), const_spec(oadj_r),
            ],
            out_specs=pl.BlockSpec((bb, out_dim), lambda i: (i, 0)),
        ),
        compiler_params=pltpu.CompilerParams(
            dimension_semantics=("parallel",)),
    )(xf, w1c, b1r, w2c, b2r, w3c, b3r, ratio_r, oadj_r)
    return out


def init_linear(key, in_f, out_f):
    """Deterministic PyTorch-style Linear init (uniform +/- 1/sqrt(fan_in))."""
    kw, kb = jax.random.split(key)
    bound = 1.0 / (in_f ** 0.5)
    # store weight already transposed: (in_f, out_f) so forward is x @ W + b
    w = jax.random.uniform(kw, (in_f, out_f), jnp.float32, -bound, bound)
    b = jax.random.uniform(kb, (out_f,), jnp.float32, -bound, bound)
    return w, b


def reference_forward(x, w1, b1, w2, b2, w3, b3, ratio, action_min,
                      compute_dtype):
    """Pure-JAX reference with the same mixed-precision policy as the kernel."""
    cd = compute_dtype
    h = jnp.dot(x.astype(cd), w1.astype(cd),
                preferred_element_type=jnp.float32) + b1
    h = jnp.maximum(h, 0.0)
    h = jnp.dot(h.astype(cd), w2.astype(cd),
                preferred_element_type=jnp.float32) + b2
    h = jnp.maximum(h, 0.0)
    y = jnp.dot(h.astype(cd), w3.astype(cd),
                preferred_element_type=jnp.float32) + b3
    y = jnp.tanh(y)
    # RescaleLayer with net range (tanh(-inf), tanh(inf)) = (-1, 1)
    return (y - (-1.0)) * ratio + action_min


if __name__ == "__main__":
    # small shapes consistent with the module
    batch = 24            # not a multiple of the tile -> exercises ragged tile
    input_dim = 16
    hidden_dims = (32, 32)
    action_min = jnp.array([-2.0, -1.0, -0.5, -3.0], dtype=jnp.float32)
    action_max = jnp.array([2.0, 1.0, 0.5, 3.0], dtype=jnp.float32)
    out_dim = action_min.shape[0]

    key = jax.random.PRNGKey(0)
    k_x, k1, k2, k3 = jax.random.split(key, 4)

    x = jax.random.normal(k_x, (batch, input_dim), jnp.float32)
    w1, b1 = init_linear(k1, input_dim, hidden_dims[0])
    w2, b2 = init_linear(k2, hidden_dims[0], hidden_dims[1])
    w3, b3 = init_linear(k3, hidden_dims[1], out_dim)

    # RescaleLayer params: net range is (tanh(-inf), tanh(inf)) = (-1, 1)
    ratio = (action_max - action_min) / 2.0

    out = fcdp_forward(x, w1, b1, w2, b2, w3, b3, ratio, action_min)
    out = jax.block_until_ready(out)
    assert out.shape == (batch, out_dim)

    # tight check vs a reference that uses the same bf16-input / f32-accum policy
    ref_bf16 = reference_forward(x, w1, b1, w2, b2, w3, b3, ratio, action_min,
                                 jnp.bfloat16)
    assert jnp.allclose(out, ref_bf16, atol=1e-4, rtol=1e-4)

    # loose check vs the full-f32 PyTorch-semantics reference
    ref_f32 = reference_forward(x, w1, b1, w2, b2, w3, b3, ratio, action_min,
                                jnp.float32)
    assert jnp.allclose(out, ref_f32, atol=5e-2, rtol=5e-2)

    print("KERNEL_OK")
</pallas_src>

<mosaic_0001>
module attributes {stable_mosaic.version = 11 : i64} {
  func.func @fcdp_kernel(%arg0: i32, %arg1: memref<16x16xf32, #tpu.memory_space<vmem>>, %arg2: memref<16x32xbf16, #tpu.memory_space<vmem>>, %arg3: memref<1x32xf32, #tpu.memory_space<vmem>>, %arg4: memref<32x32xbf16, #tpu.memory_space<vmem>>, %arg5: memref<1x32xf32, #tpu.memory_space<vmem>>, %arg6: memref<32x4xbf16, #tpu.memory_space<vmem>>, %arg7: memref<1x4xf32, #tpu.memory_space<vmem>>, %arg8: memref<1x4xf32, #tpu.memory_space<vmem>>, %arg9: memref<1x4xf32, #tpu.memory_space<vmem>>, %arg10: memref<16x4xf32, #tpu.memory_space<vmem>>) attributes {dimension_semantics = [#tpu.dimension_semantics<parallel>], iteration_bounds = array<i64: 2>, scalar_prefetch = 0 : i64, scratch_operands = 0 : i64, tpu.core_type = #tpu.core_type<tc>, window_params = [{transform_indices = @transform_0, window_bounds = array<i64: 16, 16>}, {pipeline_mode = #tpu.pipeline_mode<synchronous>, transform_indices = @transform_1, window_bounds = array<i64: 16, 32>}, {pipeline_mode = #tpu.pipeline_mode<synchronous>, transform_indices = @transform_2, window_bounds = array<i64: 1, 32>}, {pipeline_mode = #tpu.pipeline_mode<synchronous>, transform_indices = @transform_3, window_bounds = array<i64: 32, 32>}, {pipeline_mode = #tpu.pipeline_mode<synchronous>, transform_indices = @transform_4, window_bounds = array<i64: 1, 32>}, {pipeline_mode = #tpu.pipeline_mode<synchronous>, transform_indices = @transform_5, window_bounds = array<i64: 32, 4>}, {pipeline_mode = #tpu.pipeline_mode<synchronous>, transform_indices = @transform_6, window_bounds = array<i64: 1, 4>}, {pipeline_mode = #tpu.pipeline_mode<synchronous>, transform_indices = @transform_7, window_bounds = array<i64: 1, 4>}, {pipeline_mode = #tpu.pipeline_mode<synchronous>, transform_indices = @transform_8, window_bounds = array<i64: 1, 4>}, {transform_indices = @transform_9, window_bounds = array<i64: 16, 4>}]} {
    %c0 = arith.constant 0 : index
    %c0_0 = arith.constant 0 : index
    %0 = vector.load %arg1[%c0, %c0_0] : memref<16x16xf32, #tpu.memory_space<vmem>>, vector<16x16xf32>
    %1 = arith.truncf %0 : vector<16x16xf32> to vector<16x16xbf16>
    %c0_1 = arith.constant 0 : index
    %c0_2 = arith.constant 0 : index
    %2 = vector.load %arg2[%c0_1, %c0_2] : memref<16x32xbf16, #tpu.memory_space<vmem>>, vector<16x32xbf16>
    %cst = arith.constant dense<0.000000e+00> : vector<16x32xf32>
    %3 = tpu.matmul %1, %2, %cst {dimension_numbers = #tpu.dot_dimension_numbers<[1], [0], [0], [1], [0, 0, 1, 1], [], []>} : vector<16x16xbf16>, vector<16x32xbf16>, vector<16x32xf32> -> vector<16x32xf32>
    %c0_3 = arith.constant 0 : index
    %c0_4 = arith.constant 0 : index
    %4 = vector.load %arg3[%c0_3, %c0_4] : memref<1x32xf32, #tpu.memory_space<vmem>>, vector<1x32xf32>
    %5 = vector.broadcast %4 : vector<1x32xf32> to vector<16x32xf32>
    %6 = arith.addf %3, %5 : vector<16x32xf32>
    %cst_5 = arith.constant 0.000000e+00 : f32
    %7 = vector.broadcast %cst_5 : f32 to vector<16x32xf32>
    %8 = arith.maximumf %6, %7 : vector<16x32xf32>
    %9 = arith.truncf %8 : vector<16x32xf32> to vector<16x32xbf16>
    %c0_6 = arith.constant 0 : index
    %c0_7 = arith.constant 0 : index
    %10 = vector.load %arg4[%c0_6, %c0_7] : memref<32x32xbf16, #tpu.memory_space<vmem>>, vector<32x32xbf16>
    %cst_8 = arith.constant dense<0.000000e+00> : vector<16x32xf32>
    %11 = tpu.matmul %9, %10, %cst_8 {dimension_numbers = #tpu.dot_dimension_numbers<[1], [0], [0], [1], [0, 0, 1, 1], [], []>} : vector<16x32xbf16>, vector<32x32xbf16>, vector<16x32xf32> -> vector<16x32xf32>
    %c0_9 = arith.constant 0 : index
    %c0_10 = arith.constant 0 : index
    %12 = vector.load %arg5[%c0_9, %c0_10] : memref<1x32xf32, #tpu.memory_space<vmem>>, vector<1x32xf32>
    %13 = vector.broadcast %12 : vector<1x32xf32> to vector<16x32xf32>
    %14 = arith.addf %11, %13 : vector<16x32xf32>
    %cst_11 = arith.constant 0.000000e+00 : f32
    %15 = vector.broadcast %cst_11 : f32 to vector<16x32xf32>
    %16 = arith.maximumf %14, %15 : vector<16x32xf32>
    %17 = arith.truncf %16 : vector<16x32xf32> to vector<16x32xbf16>
    %c0_12 = arith.constant 0 : index
    %c0_13 = arith.constant 0 : index
    %18 = vector.load %arg6[%c0_12, %c0_13] : memref<32x4xbf16, #tpu.memory_space<vmem>>, vector<32x4xbf16>
    %cst_14 = arith.constant dense<0.000000e+00> : vector<16x4xf32>
    %19 = tpu.matmul %17, %18, %cst_14 {dimension_numbers = #tpu.dot_dimension_numbers<[1], [0], [0], [1], [0, 0, 1, 1], [], []>} : vector<16x32xbf16>, vector<32x4xbf16>, vector<16x4xf32> -> vector<16x4xf32>
    %c0_15 = arith.constant 0 : index
    %c0_16 = arith.constant 0 : index
    %20 = vector.load %arg7[%c0_15, %c0_16] : memref<1x4xf32, #tpu.memory_space<vmem>>, vector<1x4xf32>
    %21 = vector.broadcast %20 : vector<1x4xf32> to vector<16x4xf32>
    %22 = arith.addf %19, %21 : vector<16x4xf32>
    %23 = math.tanh %22 : vector<16x4xf32>
    %c0_17 = arith.constant 0 : index
    %c0_18 = arith.constant 0 : index
    %24 = vector.load %arg8[%c0_17, %c0_18] : memref<1x4xf32, #tpu.memory_space<vmem>>, vector<1x4xf32>
    %25 = vector.broadcast %24 : vector<1x4xf32> to vector<16x4xf32>
    %26 = arith.mulf %23, %25 : vector<16x4xf32>
    %c0_19 = arith.constant 0 : index
    %c0_20 = arith.constant 0 : index
    %27 = vector.load %arg9[%c0_19, %c0_20] : memref<1x4xf32, #tpu.memory_space<vmem>>, vector<1x4xf32>
    %28 = vector.broadcast %27 : vector<1x4xf32> to vector<16x4xf32>
    %29 = arith.addf %26, %28 : vector<16x4xf32>
    %c0_21 = arith.constant 0 : index
    %c0_22 = arith.constant 0 : index
    %30 = vector.load %arg10[%c0_21, %c0_22] : memref<16x4xf32, #tpu.memory_space<vmem>>, vector<16x4xf32>
    tpu.vector_store %arg10[%c0_21, %c0_22], %29 {strides = array<i32>} : memref<16x4xf32, #tpu.memory_space<vmem>>, vector<16x4xf32>,
    return
  }
  func.func @transform_0(%arg0: i32) -> (i32, i32) {
    %c0_i32 = arith.constant 0 : i32
    %c0_i32_0 = arith.constant 0 : i32
    return %arg0, %c0_i32 : i32, i32
  }
  func.func @transform_1(%arg0: i32) -> (i32, i32) {
    %c0_i32 = arith.constant 0 : i32
    %c0_i32_0 = arith.constant 0 : i32
    %c0_i32_1 = arith.constant 0 : i32
    return %c0_i32, %c0_i32_0 : i32, i32
  }
  func.func @transform_2(%arg0: i32) -> (i32, i32) {
    %c0_i32 = arith.constant 0 : i32
    %c0_i32_0 = arith.constant 0 : i32
    %c0_i32_1 = arith.constant 0 : i32
    return %c0_i32, %c0_i32_0 : i32, i32
  }
  func.func @transform_3(%arg0: i32) -> (i32, i32) {
    %c0_i32 = arith.constant 0 : i32
    %c0_i32_0 = arith.constant 0 : i32
    %c0_i32_1 = arith.constant 0 : i32
    return %c0_i32, %c0_i32_0 : i32, i32
  }
  func.func @transform_4(%arg0: i32) -> (i32, i32) {
    %c0_i32 = arith.constant 0 : i32
    %c0_i32_0 = arith.constant 0 : i32
    %c0_i32_1 = arith.constant 0 : i32
    return %c0_i32, %c0_i32_0 : i32, i32
  }
  func.func @transform_5(%arg0: i32) -> (i32, i32) {
    %c0_i32 = arith.constant 0 : i32
    %c0_i32_0 = arith.constant 0 : i32
    %c0_i32_1 = arith.constant 0 : i32
    return %c0_i32, %c0_i32_0 : i32, i32
  }
  func.func @transform_6(%arg0: i32) -> (i32, i32) {
    %c0_i32 = arith.constant 0 : i32
    %c0_i32_0 = arith.constant 0 : i32
    %c0_i32_1 = arith.constant 0 : i32
    return %c0_i32, %c0_i32_0 : i32, i32
  }
  func.func @transform_7(%arg0: i32) -> (i32, i32) {
    %c0_i32 = arith.constant 0 : i32
    %c0_i32_0 = arith.constant 0 : i32
    %c0_i32_1 = arith.constant 0 : i32
    return %c0_i32, %c0_i32_0 : i32, i32
  }
  func.func @transform_8(%arg0: i32) -> (i32, i32) {
    %c0_i32 = arith.constant 0 : i32
    %c0_i32_0 = arith.constant 0 : i32
    %c0_i32_1 = arith.constant 0 : i32
    return %c0_i32, %c0_i32_0 : i32, i32
  }
  func.func @transform_9(%arg0: i32) -> (i32, i32) {
    %c0_i32 = arith.constant 0 : i32
    %c0_i32_0 = arith.constant 0 : i32
    return %arg0, %c0_i32 : i32, i32
  }
}

</mosaic_0001>

<bundles_post_ra>
// kernel: fcdp_forward.1
= control target key start
LH: loop header
LB: loop body
LE: loop exit
PB: predicated region body
PF: predicated region fallthrough
CT: control target
= control target key end

     0   :  { %s1111_s30 = smov 0   ;;  %s1113_s10 = smov 0   ;;  %s1226_s0 = inlined_call_operand.vmem [shape: f32[24,16], index: 0, kind: input, shape index: {}]   ;;  %s1227_s1 = inlined_call_operand.vmem [shape: bf16[16,32], index: 1, kind: input, shape index: {}]   ;;  %s1228_s2 = inlined_call_operand.vmem [shape: f32[1,32], index: 2, kind: input, shape index: {}]   ;;  %s1229_s3 = inlined_call_operand.vmem [shape: bf16[32,32], index: 3, kind: input, shape index: {}]   ;;  %s1230_s4 = inlined_call_operand.vmem [shape: f32[1,32], index: 4, kind: input, shape index: {}]   ;;  %s1231_s5 = inlined_call_operand.vmem [shape: bf16[32,4], index: 5, kind: input, shape index: {}]   ;;  %s1232_s6 = inlined_call_operand.vmem [shape: f32[1,4], index: 6, kind: input, shape index: {}]   ;;  %s1233_s7 = inlined_call_operand.vmem [shape: f32[1,4], index: 7, kind: input, shape index: {}]   ;;  %s1234_s8 = inlined_call_operand.vmem [shape: f32[1,4], index: 8, kind: input, shape index: {}]   ;;  %s1235_s9 = inlined_call_operand.vmem [shape: f32[24,4], index: 9, kind: output, shape index: {}]  }
   0x1   :  { %s1115_s11 = smov 0  }
   0x2 LB: > { %s1124_s12 = sadd.s32 4294967295, %s1025_s11   ;;  %s1126_s13 = sadd.s32 1, %s1025_s11   ;;  %s1025_s11 = sphi %s1115_s11, %s1239_s11   ;;  %s1021_s10 = sphi %s1113_s10, %s1238_s10   ;;  %s1017_s30 = sphi %s1111_s30, %s1237_s30  }
   0x3   : > { %s217_s14 = ssub.s32 %s1025_s11, %s1126_s13  ;;  %s220_s15 = sadd.s32 1, %s1021_s10 }
   0x4   : > { %p218_p0 = scmp.eq.s32.totalorder %s217_s14, 0  ;;  %p230_p1 = scmp.ne.s32.totalorder %s1021_s10, %s1017_s30 }
   0x5   : > { %p231_p2 = scmp.eq.s32.totalorder %s1124_s12, 1  ;;  %p805_p3 = scmp.ge.s32.totalorder %s1025_s11, 1 }
   0x6   : > { %s1134_s16 = scalar_select %p218_p0, %s1021_s10, %s220_s15  }
   0x7   : > { %p1136_p4 = por %p231_p2, %p230_p1  ;;  %p296_p5 = scmp.lt.s32.totalorder %s1025_s11, 3 }
   0x9   : > { %p297_p6 = pnand %p805_p3, %p296_p5 }
   0xa   : > { %s1144_s20 = sshll.u32 (!%p297_p6), %s1124_s12, 1  ;;  %s332_s26 = sand.u32 (!%p297_p6), 1, %s1017_s30  }
   0xb   : > { %300 = sbr.rel (%p297_p6) target bundleno = 686 (0x2ae), region = 56  ;;  %p340_p7 = scmp.lt.s32.totalorder (!%p297_p6), %s1144_s20, 2 }
   0xc   : > { %s806_s29 = sshll.u32 (!%p297_p6), %s332_s26, 4 }
   0xd   : > { %s1181_s15 = scalar_lea.vmem (!%p297_p6), [#allocation2], %s806_s29  }
  0x10   : > { %v962_v0 = vld [vmem:[%s1227_s1] sm:$0xff]   ;;  %v1059_v1 = vmov 0.0   ;;  %vm1060_vm0 = vmmov 0   ;;  %s341_s21 = scalar_select %p340_p7, %s1144_s20, 2  ;;  %vm373_vm1 = vcmask 130048   ;;  %v963_v5 = vld [vmem:[%s1229_s3 + $0x8] sm:$0xff]  }
  0x11   : > { %850 = vmatprep.subr.bf16.mxu0 %v1059_v1  ;;  %856 = vmatprep.subr.bf16.mxu1 %v1059_v1  ;;  %v964_v6 = vld [vmem:[%s1229_s3] sm:$0xff]   ;;  %vm444_vm2 = vcmask 261120   ;;  %v965_v17 = vld [vmem:[%s1231_s5 + $0x8] sm:$0xff]   ;;  %vm579_vm3 = vcmask 31744   ;;  %s590_s30 = ssub.s32 (%p1136_p4), 3, %s1144_s20  ;;  %s839_s18 = sshll.u32 (%p1136_p4), %s1124_s12, 4 }
  0x12   : > { %851 = vmatpush3.bf16.msra.mxu0 %v962_v0  ;;  %852 = vmatprep.mubr.msk.bf16.mxu0 %vm1060_vm0, %v1059_v1  ;;  %s808_s22 = sshll.u32 %s341_s21, 3  ;;  %v809_v7 = vld [vmem:[%s1228_s2] ss:$0 sm:$0xff]  ;;  %p591_p8 = scmp.lt.s32.totalorder (%p1136_p4), %s590_s30, 2 }
  0x13   : > { %860 = vmatprep.mubr.msk.bf16.mxu1 %vm1060_vm0, %v1059_v1  ;;  %864 = vmatprep.subr.bf16.mxu0 %v1059_v1  ;;  %s343_s25 = scalar_lea.vmem %s1226_s0, %s808_s22  ;;  %v966_v18 = vld [vmem:[%s1231_s5] sm:$0xff]   ;;  %s1192_s22 = scalar_lea.vmem (%p1136_p4), %s1235_s9, %s839_s18  }
  0x14   : > { %v355_v2 = vld [vmem:[%s343_s25] sm:$0xff]  ;;  %v356_v3 = vld [vmem:[%s343_s25 + $0x8] sm:$0xff]  ;;  %857 = vmatpush3.bf16.msra.mxu1 %v963_v5 }
  0x15   : > { %v357_v4 = vpack.c.bf16 %v356_v3, %v355_v2  ;;  %858 = vmatprep.subr.bf16.mxu1 %v1059_v1  ;;  %v812_v19 = vld [vmem:[%s1230_s4] ss:$0 sm:$0xff] }
  0x16   : > { %v816_v29 = vld [vmem:[%s1232_s6] ss:$0 sm:$0xff] }
  0x17   : > { %853 = vmatmul.mubr.msk.bf16.vlgmr.msra.gmra.mxu0 %vm373_vm1, %v357_v4  ;;  %v820_v36 = vld [vmem:[%s1233_s7] ss:$0 sm:$0xff] }
  0x18   : > { %868 = vmatprep.mubr.msk.bf16.mxu0 %vm1060_vm0, %v1059_v1  ;;  %859 = vmatpush3.bf16.msra.mxu1 %v964_v6  ;;  %v821_v38 = vld [vmem:[%s1234_s8] ss:$0 sm:$0xff] }
  0x19   : > { %865 = vmatpush3.bf16.msra.mxu0 %v965_v17 }
  0x1a   : > { %866 = vmatprep.subr.bf16.mxu0 %v1059_v1 }
  0x1d   : > { %867 = vmatpush3.bf16.msra.mxu0 %v966_v18 }
  0xd7   : > { %v411_v8 = vpop.f32.mrf.mxu0 }
  0xd8   : > { %v412_v10 = vadd.f32 %v809_v7, %v411_v8 }
  0xd9   : > { %v854_v9 = vpop.f32.mrf.mxu0 }
  0xda   : > { %v418_v14 = vmax.f32 %v412_v10, 0.0 }
  0xdb   : > { %v414_v11 = vpop.f32.mrf.mxu0 }
  0xdc   : > { %v415_v12 = vadd.f32 %v809_v7, %v414_v11 }
  0xdd   : > { %v855_v13 = vpop.f32.mrf.mxu0 }
  0xde   : > { %v419_v15 = vmax.f32 %v415_v12, 0.0 }
  0xe0   : > { %v420_v16 = vpack.c.bf16 %v419_v15, %v418_v14 }
  0xe2   : > { %861 = vmatmul.mubr.msk.bf16.vlgmr.msra.gmra.mxu1 %vm444_vm2, %v420_v16 }
 0x1a2   : > { %v482_v20 = vpop.f32.mrf.mxu1 }
 0x1a3   : > { %v483_v22 = vadd.f32 %v812_v19, %v482_v20 }
 0x1a4   : > { %v862_v21 = vpop.f32.mrf.mxu1 }
 0x1a5   : > { %v489_v26 = vmax.f32 %v483_v22, 0.0 }
 0x1a6   : > { %v485_v23 = vpop.f32.mrf.mxu1 }
 0x1a7   : > { %v486_v24 = vadd.f32 %v812_v19, %v485_v23 }
 0x1a8   : > { %v863_v25 = vpop.f32.mrf.mxu1 }
 0x1a9   : > { %v490_v27 = vmax.f32 %v486_v24, 0.0 }
 0x1ab   : > { %v491_v28 = vpack.c.bf16 %v490_v27, %v489_v26 }
 0x1ad   : > { %869 = vmatmul.mubr.msk.bf16.vlgmr.msra.gmra.mxu0 %vm444_vm2, %v491_v28 }
 0x26d   : > { %v552_v30 = vpop.f32.mrf.mxu0 }
 0x26e   : > { %v553_v31 = vadd.f32 %v816_v29, %v552_v30 }
 0x26f   : > { %v870_v32 = vpop.f32.mrf.mxu0 }
 0x270   : > { %967 = vtanh.f32 %v553_v31 }
 0x271   : > { %v555_v33 = vpop.f32.mrf.mxu0 }
 0x272   : > { %v556_v34 = vadd.f32 %v816_v29, %v555_v33 }
 0x273   : > { %v871_v35 = vpop.f32.mrf.mxu0 }
 0x274   : > { %969 = vtanh.f32 %v556_v34 }
 0x27d   : > { %v968_v37 = vpop.eup %967 }
 0x27e   : > { %v568_v39 = vmul.f32 %v968_v37, %v820_v36 }
 0x280   : > { %v577_v40 = vadd.f32 %v821_v38, %v568_v39 }
 0x281   : > { %v970_v41 = vpop.eup %969 }
 0x282   : > { %580 = vst.msk [vmem:[%s1181_s15] sm:$0xff] %vm579_vm3, %v577_v40  ;;  %v569_v42 = vmul.f32 %v970_v41, %v820_v36  ;;  %588 = sbr.rel (!%p1136_p4) target bundleno = 686 (0x2ae), region = 60 }
 0x284   : > { %v578_v43 = vadd.f32 %v821_v38, %v569_v42 }
 0x286   : > { %581 = vst.msk [vmem:[%s1181_s15 + $0x8] sm:$0xff] %vm579_vm3, %v578_v43 }
 0x287   : > { %s1241_s30 = smov (!%p591_p8, %s590_s30), 2 }
 0x288   : > { %s824_s23 = sshll.u32 %s1241_s30, 7 }
 0x289   : > { %p827_p9 = scmp.eq.s32.totalorder %s824_s23, 0 }
 0x28a   : > { %s1198_s24 = sshrl.u32 (!%p827_p9), %s1241_s30, 1 }
 0x28b   : > { %599 = sbr.rel (%p827_p9) target bundleno = 686 (0x2ae), region = 64  ;;  %p828_p10 = scmp.le.s32.totalorder (!%p827_p9), %s1198_s24, 0 }
 0x290   : > { %758 = sbr.rel (%p828_p10) target bundleno = 669 (0x29d), region = 140  ;;  %s1027_s12 = smov (!%p828_p10), %s1192_s22  }
 0x291   : > { %s1031_s17 = smov (!%p828_p10), %s1181_s15   ;;  %s1035_s20 = smov (!%p828_p10), 0  }
 0x292   : > { %s1039_s25 = smov (!%p828_p10), 0  }
 0x295 LB: >> { %v664_v44 = vld [vmem:[%s1033_s17] sm:$0xff]  ;;  %v666_v45 = vld [vmem:[%s1033_s17 + $0x8] sm:$0xff]  ;;  %s668_s26 = sadd.s32 1, %s1037_s20  ;;  %s658_s25 = sadd.s32 1, %s1041_s25   ;;  %s1041_s25 = sphi %s1039_s25, %s658_s25   ;;  %s1037_s20 = sphi %s1035_s20, %s1036_s20   ;;  %s1033_s17 = sphi %s1031_s17, %s673_s17   ;;  %s1029_s12 = sphi %s1027_s12, %s674_s12  }
 0x296   : >> { %665 = vst [vmem:[%s1029_s12] sm:$0xff] %v664_v44  ;;  %667 = vst [vmem:[%s1029_s12 + $0x8] sm:$0xff] %v666_v45  ;;  %p669_p11 = scmp.ge.s32.totalorder %s668_s26, %s1198_s24  ;;  %p657_p12 = scmp.ge.s32.totalorder %s658_s25, %s1198_s24 }
 0x298   : >> { %s1243_s26 = smov (%p669_p11, %s668_s26), 0  ;;  %660 = sbr.rel (!%p657_p12) target bundleno = 661 (0x295), region = 146 }
 0x299   : >> { %s829_s27 = sshll.u32 %s1243_s26, 4  ;;  %s1036_s20 = smov %s1243_s26  }
 0x29a   : >> { %s673_s17 = scalar_lea.vmem %s1181_s15, %s829_s27 [#allocation2]   ;;  %s674_s12 = scalar_lea.vmem %s1192_s22, %s829_s27  }
 0x29d PF: > { %s1208_s28 = sand.u32 1, %s1241_s30   ;;  %s840_s29 = sshll.u32 %s1198_s24, 4 }
 0x29e   : > { %s679_s11 = scalar_lea.vmem %s1181_s15, %s840_s29 [#allocation2]   ;;  %s681_s14 = scalar_lea.vmem %s1192_s22, %s840_s29  }
 0x29f   : > { %p834_p13 = scmp.le.s32.totalorder %s1208_s28, 0 }
 0x2a0   : > { %s1043_s18 = smov (!%p834_p13), %s681_s14   ;;  %s1047_s19 = smov (!%p834_p13), %s679_s11  }
 0x2a1   : > { %772 = sbr.rel (%p834_p13) target bundleno = 686 (0x2ae), region = 151  ;;  %s1051_s21 = smov (!%p834_p13), 0  }
 0x2a2   : > { %s1055_s23 = smov (!%p834_p13), 0  }
 0x2a6 LB: >> { %v691_v46 = vld [vmem:[%s1049_s19] sm:$0xff]  ;;  %s693_s30 = sadd.s32 1, %s1053_s21  ;;  %s685_s23 = sadd.s32 1, %s1057_s23   ;;  %s1057_s23 = sphi %s1055_s23, %s685_s23   ;;  %s1053_s21 = sphi %s1051_s21, %s1052_s21   ;;  %s1049_s19 = sphi %s1047_s19, %s698_s19   ;;  %s1045_s18 = sphi %s1043_s18, %s699_s18  }
 0x2a7   : >> { %692 = vst [vmem:[%s1045_s18] sm:$0xff] %v691_v46  ;;  %p694_p0 = scmp.ge.s32.totalorder %s693_s30, %s1208_s28  ;;  %p684_p1 = scmp.ge.s32.totalorder %s685_s23, %s1208_s28 }
 0x2a9   : >> { %s1245_s30 = smov (%p694_p0, %s693_s30), 0  ;;  %687 = sbr.rel (!%p684_p1) target bundleno = 678 (0x2a6), region = 157 }
 0x2aa   : >> { %s835_s15 = sshll.u32 %s1245_s30, 3  ;;  %s1052_s21 = smov %s1245_s30  }
 0x2ab   : >> { %s698_s19 = scalar_lea.vmem %s679_s11, %s835_s15 [#allocation2]   ;;  %s699_s18 = scalar_lea.vmem %s681_s14, %s835_s15  }
 0x2ae PF: > { %p16_p2 = scmp.ge.s32.totalorder %s1126_s13, 4   ;;  %s1237_s30 = smov %s1021_s10 }
 0x2af   : > { %s1238_s10 = smov %s1134_s16  ;;  %s1239_s11 = smov %s1126_s13 }
 0x2b0   :  { %18 = sbr.rel (!%p16_p2) target bundleno = 2 (0x2), region = 168 }

</bundles_post_ra>
